<compile_context>
chip_gen: v6e
topology: v6e:2x2x1
jax: 0.10.0
libtpu: 0.0.40
codegen_flags: <defaults>
</compile_context>

<pallas_src>
import functools
import math

import jax
import jax.numpy as jnp
from jax.experimental import pallas as pl
from jax.experimental.pallas import tpu as pltpu


def conv_block_kernel(win_ref, mi_ref, wf_ref, w2_ref, bf_ref, bl2_ref,
                      out_ref, *, ker, wpad):
    # win_ref : (1, 1, Cin, Lin)   row-window of the width-padded input canvas
    # mi_ref  : (1, 2, T)          packed [mask; inv_mask] canvas, T = rows*wpad
    # wf_ref  : (KK, Cout+Cmid, Cin)  fused high/low 3x3 weights
    # w2_ref  : (Cout, Cmid)          1x1 weights
    # bf_ref  : (Cout+Cmid, 1)        fused high/low 3x3 biases (f32)
    # bl2_ref : (Cout, 1)             1x1 bias (f32)
    # out_ref : (1, Cout, T)          lane-dense output tile
    cout = out_ref.shape[1]
    cf = wf_ref.shape[1]
    t = out_ref.shape[-1]

    # Fused high+low convolution: accumulate over the ker*ker taps.
    # Each tap is a static lane-slice of the resident window (no HBM re-read).
    acc = jnp.zeros((cf, t), jnp.float32)
    for dy in range(ker):
        for dx in range(ker):
            k = dy * ker + dx
            off = dy * wpad + dx
            tap = win_ref[0, 0, :, off:off + t]                 # (Cin, T)
            acc = acc + jnp.dot(wf_ref[k], tap,
                                preferred_element_type=jnp.float32)

    # Single fused bias add for both 3x3 branches, then split along sublanes.
    acc = acc + bf_ref[...]                                     # (CF, T)
    m = mi_ref[0, 0:1, :]    # (1, T) mask, broadcasts over channel sublanes
    im = mi_ref[0, 1:2, :]   # (1, T) inv_mask

    x1 = acc[:cout, :] * m                                      # (Cout, T)
    x2 = acc[cout:, :] * im                                     # (Cmid, T)
    x2 = (jnp.dot(w2_ref[...], x2.astype(w2_ref.dtype),
                  preferred_element_type=jnp.float32)
          + bl2_ref[...]) * im                                  # (Cout, T)

    out_ref[0] = (x1 + x2).astype(out_ref.dtype)


def _auto_tile_rows(h, wp, budget_cols=16384):
    """Largest row-tile (divisor of h) whose flattened width fits the budget."""
    for th in range(h, 0, -1):
        if h % th:
            continue
        granule = 128 // math.gcd(th, 128)
        wpad = -(-wp // granule) * granule
        if th * wpad <= budget_cols:
            return th
    return 1


def conv_block_forward(x, mask, inv_mask, params, ker, *,
                       tile_rows=None, compute_dtype=None):
    """Pallas implementation of Conv_block.forward (eval=False), NCHW I/O."""
    wh, bh, wl1, bl1, wl2, bl2 = params
    B, Cin, H, W = x.shape
    Cout = wh.shape[0]
    Cmid = wl1.shape[0]
    CF = Cout + Cmid
    p = ker // 2
    KK = ker * ker
    Hp, Wp = H + 2 * p, W + 2 * p
    out_dtype = x.dtype
    if compute_dtype is None:
        compute_dtype = x.dtype

    # ---- row tiling & width-padded canvas geometry ----
    TH = _auto_tile_rows(H, Wp) if tile_rows is None else tile_rows
    assert H % TH == 0, "tile_rows must divide H"
    nT = H // TH
    granule = 128 // math.gcd(TH, 128)
    Wpad = -(-Wp // granule) * granule           # tile width T = TH*Wpad % 128 == 0
    T = TH * Wpad
    Lin = (TH + 2 * p + 1) * Wpad                # window rows: TH + halo + 1 spare

    # ---- glue: layout prep (no FLOPs, no 9x duplication) ----
    xc = x.astype(compute_dtype)
    # pad: p rows top, p+1 rows bottom (1 spare zero row), p cols left,
    #      right up to Wpad (Wpad >= W + 2p always holds).
    xp = jnp.pad(xc, ((0, 0), (0, 0), (p, p + 1), (p, Wpad - W - p)))
    xpf = xp.reshape(B, Cin, (Hp + 1) * Wpad)    # width-padded flattened canvas
    # overlapping row windows (halo = 2p+1 rows per tile)
    windows = jnp.stack(
        [xpf[:, :, j * TH * Wpad: j * TH * Wpad + Lin] for j in range(nT)],
        axis=1)                                  # (B, nT, Cin, Lin)

    def to_canvas(a):                            # (B,1,H,W) -> (B,1,H*Wpad) f32
        a = jnp.pad(a.astype(jnp.float32),
                    ((0, 0), (0, 0), (0, 0), (0, Wpad - W)))
        return a.reshape(B, 1, H * Wpad)

    # one packed stream: [mask; inv_mask] -> (B, 2, H*Wpad)
    mi = jnp.concatenate([to_canvas(mask), to_canvas(inv_mask)], axis=1)

    # fused weights: (Cout,Cin,k,k)+(Cmid,Cin,k,k) -> (KK, Cout+Cmid, Cin)
    wf = jnp.concatenate(
        [jnp.transpose(wh, (2, 3, 0, 1)).reshape(KK, Cout, Cin),
         jnp.transpose(wl1, (2, 3, 0, 1)).reshape(KK, Cmid, Cin)],
        axis=1).astype(compute_dtype)
    w2 = wl2.reshape(Cout, Cmid).astype(compute_dtype)
    bf = jnp.concatenate([bh, bl1]).reshape(CF, 1).astype(jnp.float32)
    bl2_r = bl2.reshape(Cout, 1).astype(jnp.float32)

    kernel = functools.partial(conv_block_kernel, ker=ker, wpad=Wpad)

    out_canvas = pl.pallas_call(
        kernel,
        out_shape=jax.ShapeDtypeStruct((B, Cout, H * Wpad), out_dtype),
        grid=(B, nT),
        in_specs=[
            pl.BlockSpec((1, 1, Cin, Lin), lambda b, j: (b, j, 0, 0)),
            pl.BlockSpec((1, 2, T), lambda b, j: (b, 0, j)),
            pl.BlockSpec((KK, CF, Cin), lambda b, j: (0, 0, 0)),
            pl.BlockSpec((Cout, Cmid), lambda b, j: (0, 0)),
            pl.BlockSpec((CF, 1), lambda b, j: (0, 0)),
            pl.BlockSpec((Cout, 1), lambda b, j: (0, 0)),
        ],
        out_specs=pl.BlockSpec((1, Cout, T), lambda b, j: (b, 0, j)),
        compiler_params=pltpu.CompilerParams(
            dimension_semantics=("parallel", "parallel")),
    )(windows, mi, wf, w2, bf, bl2_r)

    # canvas -> NCHW: plain reshape + width slice, no transpose needed.
    return out_canvas.reshape(B, Cout, H, Wpad)[:, :, :, :W]


def init_params(key, cin, cout, ker, r):
    """Deterministic init matching the PyTorch module's __init__."""
    cmid = cout // r
    k1, k2, k3 = jax.random.split(key, 3)
    std_h = math.sqrt(2.0 / (cout * ker * ker))
    std_l1 = math.sqrt(2.0 / (cmid * ker * ker))
    std_l2 = math.sqrt(2.0 / (cout * 1 * 1))
    wh = std_h * jax.random.normal(k1, (cout, cin, ker, ker), jnp.float32)
    wl1 = std_l1 * jax.random.normal(k2, (cmid, cin, ker, ker), jnp.float32)
    wl2 = std_l2 * jax.random.normal(k3, (cout, cmid, 1, 1), jnp.float32)
    bh = jnp.zeros((cout,), jnp.float32)
    bl1 = jnp.zeros((cmid,), jnp.float32)
    bl2 = jnp.zeros((cout,), jnp.float32)
    return wh, bh, wl1, bl1, wl2, bl2


def ref_forward(x, mask, inv, params, ker):
    """Pure-JAX reference (mirrors PyTorch forward)."""
    wh, bh, wl1, bl1, wl2, bl2 = params
    p = ker // 2
    dn = ("NCHW", "OIHW", "NCHW")
    c1 = jax.lax.conv_general_dilated(x, wh, (1, 1), [(p, p), (p, p)],
                                      dimension_numbers=dn)
    x1 = (c1 + bh.reshape(1, -1, 1, 1)) * mask
    c2 = jax.lax.conv_general_dilated(x, wl1, (1, 1), [(p, p), (p, p)],
                                      dimension_numbers=dn)
    x2 = (c2 + bl1.reshape(1, -1, 1, 1)) * inv
    c3 = jax.lax.conv_general_dilated(x2, wl2, (1, 1), [(0, 0), (0, 0)],
                                      dimension_numbers=dn)
    x2 = (c3 + bl2.reshape(1, -1, 1, 1)) * inv
    return x1 + x2


if __name__ == "__main__":
    B, Cin, Cout, ker, r = 2, 4, 8, 3, 2
    H = W = 16

    key = jax.random.PRNGKey(0)
    kx, km, kp = jax.random.split(key, 3)

    x = jax.random.normal(kx, (B, Cin, H, W), jnp.float32)
    mask = (jax.random.uniform(km, (B, 1, H, W)) > 0.5).astype(jnp.float32)
    inv_mask = 1.0 - mask
    params = init_params(kp, Cin, Cout, ker, r)

    y_ref = ref_forward(x, mask, inv_mask, params, ker)

    # f32 path (exact module semantics); 2 row-tiles per image exercise the grid.
    y = conv_block_forward(x, mask, inv_mask, params, ker, tile_rows=8)
    y = jax.block_until_ready(y)
    assert y.shape == (B, Cout, H, W)
    assert jnp.allclose(y, y_ref, rtol=1e-4, atol=5e-5), (
        float(jnp.max(jnp.abs(y - y_ref))))

    # auto-tiled path (single tile per image at this size).
    y_auto = conv_block_forward(x, mask, inv_mask, params, ker)
    y_auto = jax.block_until_ready(y_auto)
    assert jnp.allclose(y_auto, y_ref, rtol=1e-4, atol=5e-5), (
        float(jnp.max(jnp.abs(y_auto - y_ref))))

    # bf16 DMA/MXU path with f32 accumulation (perf mode for v6e/v7x).
    y_bf16 = conv_block_forward(x, mask, inv_mask, params, ker, tile_rows=8,
                                compute_dtype=jnp.bfloat16)
    y_bf16 = jax.block_until_ready(y_bf16)
    assert jnp.allclose(y_bf16, y_ref, rtol=5e-2, atol=2e-1), (
        float(jnp.max(jnp.abs(y_bf16 - y_ref))))

    print("KERNEL_OK")
</pallas_src>

<mosaic_0001>
module attributes {stable_mosaic.version = 11 : i64} {
  func.func @conv_block_kernel(%arg0: i32, %arg1: i32, %arg2: memref<1x1x4x352xf32, #tpu.memory_space<vmem>>, %arg3: memref<1x2x256xf32, #tpu.memory_space<vmem>>, %arg4: memref<9x12x4xf32, #tpu.memory_space<vmem>>, %arg5: memref<8x4xf32, #tpu.memory_space<vmem>>, %arg6: memref<12x1xf32, #tpu.memory_space<vmem>>, %arg7: memref<8x1xf32, #tpu.memory_space<vmem>>, %arg8: memref<1x8x256xf32, #tpu.memory_space<vmem>>) attributes {dimension_semantics = [#tpu.dimension_semantics<parallel>, #tpu.dimension_semantics<parallel>], iteration_bounds = array<i64: 2, 2>, scalar_prefetch = 0 : i64, scratch_operands = 0 : i64, tpu.core_type = #tpu.core_type<tc>, window_params = [{transform_indices = @transform_0, window_bounds = array<i64: 1, 1, 4, 352>}, {transform_indices = @transform_1, window_bounds = array<i64: 1, 2, 256>}, {pipeline_mode = #tpu.pipeline_mode<synchronous>, transform_indices = @transform_2, window_bounds = array<i64: 9, 12, 4>}, {pipeline_mode = #tpu.pipeline_mode<synchronous>, transform_indices = @transform_3, window_bounds = array<i64: 8, 4>}, {pipeline_mode = #tpu.pipeline_mode<synchronous>, transform_indices = @transform_4, window_bounds = array<i64: 12, 1>}, {pipeline_mode = #tpu.pipeline_mode<synchronous>, transform_indices = @transform_5, window_bounds = array<i64: 8, 1>}, {transform_indices = @transform_6, window_bounds = array<i64: 1, 8, 256>}]} {
    %cst = arith.constant 0.000000e+00 : f32
    %0 = vector.broadcast %cst : f32 to vector<12x256xf32>
    %c0 = arith.constant 0 : index
    %c0_0 = arith.constant 0 : index
    %c0_1 = arith.constant 0 : index
    %c0_2 = arith.constant 0 : index
    %1 = vector.load %arg2[%c0, %c0_0, %c0_1, %c0_2] : memref<1x1x4x352xf32, #tpu.memory_space<vmem>>, vector<1x1x4x256xf32>
    %2 = vector.shape_cast %1 : vector<1x1x4x256xf32> to vector<4x256xf32>
    %c0_3 = arith.constant 0 : index
    %c0_4 = arith.constant 0 : index
    %c0_5 = arith.constant 0 : index
    %3 = vector.load %arg4[%c0_3, %c0_4, %c0_5] : memref<9x12x4xf32, #tpu.memory_space<vmem>>, vector<1x12x4xf32>
    %4 = vector.shape_cast %3 : vector<1x12x4xf32> to vector<12x4xf32>
    %cst_6 = arith.constant dense<0.000000e+00> : vector<12x256xf32>
    %5 = tpu.matmul %4, %2, %cst_6 {dimension_numbers = #tpu.dot_dimension_numbers<[1], [0], [0], [1], [0, 0, 1, 1], [], []>} : vector<12x4xf32>, vector<4x256xf32>, vector<12x256xf32> -> vector<12x256xf32>
    %6 = arith.addf %0, %5 : vector<12x256xf32>
    %c0_7 = arith.constant 0 : index
    %c0_8 = arith.constant 0 : index
    %c0_9 = arith.constant 0 : index
    %c1 = arith.constant 1 : index
    %7 = vector.load %arg2[%c0_7, %c0_8, %c0_9, %c1] : memref<1x1x4x352xf32, #tpu.memory_space<vmem>>, vector<1x1x4x256xf32>
    %8 = vector.shape_cast %7 : vector<1x1x4x256xf32> to vector<4x256xf32>
    %c1_10 = arith.constant 1 : index
    %c0_11 = arith.constant 0 : index
    %c0_12 = arith.constant 0 : index
    %9 = vector.load %arg4[%c1_10, %c0_11, %c0_12] : memref<9x12x4xf32, #tpu.memory_space<vmem>>, vector<1x12x4xf32>
    %10 = vector.shape_cast %9 : vector<1x12x4xf32> to vector<12x4xf32>
    %cst_13 = arith.constant dense<0.000000e+00> : vector<12x256xf32>
    %11 = tpu.matmul %10, %8, %cst_13 {dimension_numbers = #tpu.dot_dimension_numbers<[1], [0], [0], [1], [0, 0, 1, 1], [], []>} : vector<12x4xf32>, vector<4x256xf32>, vector<12x256xf32> -> vector<12x256xf32>
    %12 = arith.addf %6, %11 : vector<12x256xf32>
    %c0_14 = arith.constant 0 : index
    %c0_15 = arith.constant 0 : index
    %c0_16 = arith.constant 0 : index
    %c2 = arith.constant 2 : index
    %13 = vector.load %arg2[%c0_14, %c0_15, %c0_16, %c2] : memref<1x1x4x352xf32, #tpu.memory_space<vmem>>, vector<1x1x4x256xf32>
    %14 = vector.shape_cast %13 : vector<1x1x4x256xf32> to vector<4x256xf32>
    %c2_17 = arith.constant 2 : index
    %c0_18 = arith.constant 0 : index
    %c0_19 = arith.constant 0 : index
    %15 = vector.load %arg4[%c2_17, %c0_18, %c0_19] : memref<9x12x4xf32, #tpu.memory_space<vmem>>, vector<1x12x4xf32>
    %16 = vector.shape_cast %15 : vector<1x12x4xf32> to vector<12x4xf32>
    %cst_20 = arith.constant dense<0.000000e+00> : vector<12x256xf32>
    %17 = tpu.matmul %16, %14, %cst_20 {dimension_numbers = #tpu.dot_dimension_numbers<[1], [0], [0], [1], [0, 0, 1, 1], [], []>} : vector<12x4xf32>, vector<4x256xf32>, vector<12x256xf32> -> vector<12x256xf32>
    %18 = arith.addf %12, %17 : vector<12x256xf32>
    %c0_21 = arith.constant 0 : index
    %c0_22 = arith.constant 0 : index
    %c0_23 = arith.constant 0 : index
    %c32 = arith.constant 32 : index
    %19 = vector.load %arg2[%c0_21, %c0_22, %c0_23, %c32] : memref<1x1x4x352xf32, #tpu.memory_space<vmem>>, vector<1x1x4x256xf32>
    %20 = vector.shape_cast %19 : vector<1x1x4x256xf32> to vector<4x256xf32>
    %c3 = arith.constant 3 : index
    %c0_24 = arith.constant 0 : index
    %c0_25 = arith.constant 0 : index
    %21 = vector.load %arg4[%c3, %c0_24, %c0_25] : memref<9x12x4xf32, #tpu.memory_space<vmem>>, vector<1x12x4xf32>
    %22 = vector.shape_cast %21 : vector<1x12x4xf32> to vector<12x4xf32>
    %cst_26 = arith.constant dense<0.000000e+00> : vector<12x256xf32>
    %23 = tpu.matmul %22, %20, %cst_26 {dimension_numbers = #tpu.dot_dimension_numbers<[1], [0], [0], [1], [0, 0, 1, 1], [], []>} : vector<12x4xf32>, vector<4x256xf32>, vector<12x256xf32> -> vector<12x256xf32>
    %24 = arith.addf %18, %23 : vector<12x256xf32>
    %c0_27 = arith.constant 0 : index
    %c0_28 = arith.constant 0 : index
    %c0_29 = arith.constant 0 : index
    %c33 = arith.constant 33 : index
    %25 = vector.load %arg2[%c0_27, %c0_28, %c0_29, %c33] : memref<1x1x4x352xf32, #tpu.memory_space<vmem>>, vector<1x1x4x256xf32>
    %26 = vector.shape_cast %25 : vector<1x1x4x256xf32> to vector<4x256xf32>
    %c4 = arith.constant 4 : index
    %c0_30 = arith.constant 0 : index
    %c0_31 = arith.constant 0 : index
    %27 = vector.load %arg4[%c4, %c0_30, %c0_31] : memref<9x12x4xf32, #tpu.memory_space<vmem>>, vector<1x12x4xf32>
    %28 = vector.shape_cast %27 : vector<1x12x4xf32> to vector<12x4xf32>
    %cst_32 = arith.constant dense<0.000000e+00> : vector<12x256xf32>
    %29 = tpu.matmul %28, %26, %cst_32 {dimension_numbers = #tpu.dot_dimension_numbers<[1], [0], [0], [1], [0, 0, 1, 1], [], []>} : vector<12x4xf32>, vector<4x256xf32>, vector<12x256xf32> -> vector<12x256xf32>
    %30 = arith.addf %24, %29 : vector<12x256xf32>
    %c0_33 = arith.constant 0 : index
    %c0_34 = arith.constant 0 : index
    %c0_35 = arith.constant 0 : index
    %c34 = arith.constant 34 : index
    %31 = vector.load %arg2[%c0_33, %c0_34, %c0_35, %c34] : memref<1x1x4x352xf32, #tpu.memory_space<vmem>>, vector<1x1x4x256xf32>
    %32 = vector.shape_cast %31 : vector<1x1x4x256xf32> to vector<4x256xf32>
    %c5 = arith.constant 5 : index
    %c0_36 = arith.constant 0 : index
    %c0_37 = arith.constant 0 : index
    %33 = vector.load %arg4[%c5, %c0_36, %c0_37] : memref<9x12x4xf32, #tpu.memory_space<vmem>>, vector<1x12x4xf32>
    %34 = vector.shape_cast %33 : vector<1x12x4xf32> to vector<12x4xf32>
    %cst_38 = arith.constant dense<0.000000e+00> : vector<12x256xf32>
    %35 = tpu.matmul %34, %32, %cst_38 {dimension_numbers = #tpu.dot_dimension_numbers<[1], [0], [0], [1], [0, 0, 1, 1], [], []>} : vector<12x4xf32>, vector<4x256xf32>, vector<12x256xf32> -> vector<12x256xf32>
    %36 = arith.addf %30, %35 : vector<12x256xf32>
    %c0_39 = arith.constant 0 : index
    %c0_40 = arith.constant 0 : index
    %c0_41 = arith.constant 0 : index
    %c64 = arith.constant 64 : index
    %37 = vector.load %arg2[%c0_39, %c0_40, %c0_41, %c64] : memref<1x1x4x352xf32, #tpu.memory_space<vmem>>, vector<1x1x4x256xf32>
    %38 = vector.shape_cast %37 : vector<1x1x4x256xf32> to vector<4x256xf32>
    %c6 = arith.constant 6 : index
    %c0_42 = arith.constant 0 : index
    %c0_43 = arith.constant 0 : index
    %39 = vector.load %arg4[%c6, %c0_42, %c0_43] : memref<9x12x4xf32, #tpu.memory_space<vmem>>, vector<1x12x4xf32>
    %40 = vector.shape_cast %39 : vector<1x12x4xf32> to vector<12x4xf32>
    %cst_44 = arith.constant dense<0.000000e+00> : vector<12x256xf32>
    %41 = tpu.matmul %40, %38, %cst_44 {dimension_numbers = #tpu.dot_dimension_numbers<[1], [0], [0], [1], [0, 0, 1, 1], [], []>} : vector<12x4xf32>, vector<4x256xf32>, vector<12x256xf32> -> vector<12x256xf32>
    %42 = arith.addf %36, %41 : vector<12x256xf32>
    %c0_45 = arith.constant 0 : index
    %c0_46 = arith.constant 0 : index
    %c0_47 = arith.constant 0 : index
    %c65 = arith.constant 65 : index
    %43 = vector.load %arg2[%c0_45, %c0_46, %c0_47, %c65] : memref<1x1x4x352xf32, #tpu.memory_space<vmem>>, vector<1x1x4x256xf32>
    %44 = vector.shape_cast %43 : vector<1x1x4x256xf32> to vector<4x256xf32>
    %c7 = arith.constant 7 : index
    %c0_48 = arith.constant 0 : index
    %c0_49 = arith.constant 0 : index
    %45 = vector.load %arg4[%c7, %c0_48, %c0_49] : memref<9x12x4xf32, #tpu.memory_space<vmem>>, vector<1x12x4xf32>
    %46 = vector.shape_cast %45 : vector<1x12x4xf32> to vector<12x4xf32>
    %cst_50 = arith.constant dense<0.000000e+00> : vector<12x256xf32>
    %47 = tpu.matmul %46, %44, %cst_50 {dimension_numbers = #tpu.dot_dimension_numbers<[1], [0], [0], [1], [0, 0, 1, 1], [], []>} : vector<12x4xf32>, vector<4x256xf32>, vector<12x256xf32> -> vector<12x256xf32>
    %48 = arith.addf %42, %47 : vector<12x256xf32>
    %c0_51 = arith.constant 0 : index
    %c0_52 = arith.constant 0 : index
    %c0_53 = arith.constant 0 : index
    %c66 = arith.constant 66 : index
    %49 = vector.load %arg2[%c0_51, %c0_52, %c0_53, %c66] : memref<1x1x4x352xf32, #tpu.memory_space<vmem>>, vector<1x1x4x256xf32>
    %50 = vector.shape_cast %49 : vector<1x1x4x256xf32> to vector<4x256xf32>
    %c8 = arith.constant 8 : index
    %c0_54 = arith.constant 0 : index
    %c0_55 = arith.constant 0 : index
    %51 = vector.load %arg4[%c8, %c0_54, %c0_55] : memref<9x12x4xf32, #tpu.memory_space<vmem>>, vector<1x12x4xf32>
    %52 = vector.shape_cast %51 : vector<1x12x4xf32> to vector<12x4xf32>
    %cst_56 = arith.constant dense<0.000000e+00> : vector<12x256xf32>
    %53 = tpu.matmul %52, %50, %cst_56 {dimension_numbers = #tpu.dot_dimension_numbers<[1], [0], [0], [1], [0, 0, 1, 1], [], []>} : vector<12x4xf32>, vector<4x256xf32>, vector<12x256xf32> -> vector<12x256xf32>
    %54 = arith.addf %48, %53 : vector<12x256xf32>
    %c0_57 = arith.constant 0 : index
    %c0_58 = arith.constant 0 : index
    %55 = vector.load %arg6[%c0_57, %c0_58] : memref<12x1xf32, #tpu.memory_space<vmem>>, vector<12x1xf32>
    %56 = vector.broadcast %55 : vector<12x1xf32> to vector<12x256xf32>
    %57 = arith.addf %54, %56 : vector<12x256xf32>
    %c0_59 = arith.constant 0 : index
    %c0_60 = arith.constant 0 : index
    %c0_61 = arith.constant 0 : index
    %58 = vector.load %arg3[%c0_59, %c0_60, %c0_61] : memref<1x2x256xf32, #tpu.memory_space<vmem>>, vector<1x1x256xf32>
    %59 = vector.shape_cast %58 : vector<1x1x256xf32> to vector<1x256xf32>
    %c0_62 = arith.constant 0 : index
    %c1_63 = arith.constant 1 : index
    %c0_64 = arith.constant 0 : index
    %60 = vector.load %arg3[%c0_62, %c1_63, %c0_64] : memref<1x2x256xf32, #tpu.memory_space<vmem>>, vector<1x1x256xf32>
    %61 = vector.shape_cast %60 : vector<1x1x256xf32> to vector<1x256xf32>
    %62 = vector.extract_strided_slice %57 {offsets = [0, 0], sizes = [8, 256], strides = [1, 1]} : vector<12x256xf32> to vector<8x256xf32>
    %63 = vector.broadcast %59 : vector<1x256xf32> to vector<8x256xf32>
    %64 = arith.mulf %62, %63 : vector<8x256xf32>
    %65 = vector.extract_strided_slice %57 {offsets = [8, 0], sizes = [4, 256], strides = [1, 1]} : vector<12x256xf32> to vector<4x256xf32>
    %66 = vector.broadcast %61 : vector<1x256xf32> to vector<4x256xf32>
    %67 = arith.mulf %65, %66 : vector<4x256xf32>
    %c0_65 = arith.constant 0 : index
    %c0_66 = arith.constant 0 : index
    %68 = vector.load %arg5[%c0_65, %c0_66] : memref<8x4xf32, #tpu.memory_space<vmem>>, vector<8x4xf32>
    %cst_67 = arith.constant dense<0.000000e+00> : vector<8x256xf32>
    %69 = tpu.matmul %68, %67, %cst_67 {dimension_numbers = #tpu.dot_dimension_numbers<[1], [0], [0], [1], [0, 0, 1, 1], [], []>} : vector<8x4xf32>, vector<4x256xf32>, vector<8x256xf32> -> vector<8x256xf32>
    %c0_68 = arith.constant 0 : index
    %c0_69 = arith.constant 0 : index
    %70 = vector.load %arg7[%c0_68, %c0_69] : memref<8x1xf32, #tpu.memory_space<vmem>>, vector<8x1xf32>
    %71 = vector.broadcast %70 : vector<8x1xf32> to vector<8x256xf32>
    %72 = arith.addf %69, %71 : vector<8x256xf32>
    %73 = vector.broadcast %61 : vector<1x256xf32> to vector<8x256xf32>
    %74 = arith.mulf %72, %73 : vector<8x256xf32>
    %75 = arith.addf %64, %74 : vector<8x256xf32>
    %c0_70 = arith.constant 0 : index
    %c0_71 = arith.constant 0 : index
    %c0_72 = arith.constant 0 : index
    %76 = vector.load %arg8[%c0_70, %c0_71, %c0_72] : memref<1x8x256xf32, #tpu.memory_space<vmem>>, vector<1x8x256xf32>
    %77 = vector.shape_cast %76 : vector<1x8x256xf32> to vector<8x256xf32>
    %78 = vector.shape_cast %75 : vector<8x256xf32> to vector<1x8x256xf32>
    tpu.vector_store %arg8[%c0_70, %c0_71, %c0_72], %78 {strides = array<i32>} : memref<1x8x256xf32, #tpu.memory_space<vmem>>, vector<1x8x256xf32>,
    return
  }
  func.func @transform_0(%arg0: i32, %arg1: i32) -> (i32, i32, i32, i32) {
    %c0_i32 = arith.constant 0 : i32
    %c0_i32_0 = arith.constant 0 : i32
    %c0_i32_1 = arith.constant 0 : i32
    return %arg0, %arg1, %c0_i32, %c0_i32_0 : i32, i32, i32, i32
  }
  func.func @transform_1(%arg0: i32, %arg1: i32) -> (i32, i32, i32) {
    %c0_i32 = arith.constant 0 : i32
    %c0_i32_0 = arith.constant 0 : i32
    return %arg0, %c0_i32, %arg1 : i32, i32, i32
  }
  func.func @transform_2(%arg0: i32, %arg1: i32) -> (i32, i32, i32) {
    %c0_i32 = arith.constant 0 : i32
    %c0_i32_0 = arith.constant 0 : i32
    %c0_i32_1 = arith.constant 0 : i32
    %c0_i32_2 = arith.constant 0 : i32
    return %c0_i32, %c0_i32_0, %c0_i32_1 : i32, i32, i32
  }
  func.func @transform_3(%arg0: i32, %arg1: i32) -> (i32, i32) {
    %c0_i32 = arith.constant 0 : i32
    %c0_i32_0 = arith.constant 0 : i32
    %c0_i32_1 = arith.constant 0 : i32
    return %c0_i32, %c0_i32_0 : i32, i32
  }
  func.func @transform_4(%arg0: i32, %arg1: i32) -> (i32, i32) {
    %c0_i32 = arith.constant 0 : i32
    %c0_i32_0 = arith.constant 0 : i32
    %c0_i32_1 = arith.constant 0 : i32
    return %c0_i32, %c0_i32_0 : i32, i32
  }
  func.func @transform_5(%arg0: i32, %arg1: i32) -> (i32, i32) {
    %c0_i32 = arith.constant 0 : i32
    %c0_i32_0 = arith.constant 0 : i32
    %c0_i32_1 = arith.constant 0 : i32
    return %c0_i32, %c0_i32_0 : i32, i32
  }
  func.func @transform_6(%arg0: i32, %arg1: i32) -> (i32, i32, i32) {
    %c0_i32 = arith.constant 0 : i32
    %c0_i32_0 = arith.constant 0 : i32
    return %arg0, %c0_i32, %arg1 : i32, i32, i32
  }
}

</mosaic_0001>

<bundles_post_ra>
// kernel: tpu_custom_call.1
= control target key start
LH: loop header
LB: loop body
LE: loop exit
PB: predicated region body
PF: predicated region fallthrough
CT: control target
= control target key end

     0   :  { %11 = vsyncpa [#allocation3], 0  ;;  %s2114_s0 = inlined_call_operand.vmem [shape: f32[2,2,4,352], index: 0, kind: input, shape index: {}]   ;;  %s2115_s1 = inlined_call_operand.vmem [shape: f32[2,2,512], index: 1, kind: input, shape index: {}]   ;;  %s2116_s2 = inlined_call_operand.vmem [shape: f32[9,12,4], index: 2, kind: input, shape index: {}]   ;;  %s2117_s3 = inlined_call_operand.vmem [shape: f32[8,4], index: 3, kind: input, shape index: {}]   ;;  %s2118_s4 = inlined_call_operand.vmem [shape: f32[12,1], index: 4, kind: input, shape index: {}]   ;;  %s2119_s5 = inlined_call_operand.vmem [shape: f32[8,1], index: 5, kind: input, shape index: {}]   ;;  %s2120_s6 = inlined_call_operand.hbm [shape: f32[2,8,512], index: 6, kind: output, shape index: {}]  }
   0x1   :  { %13 = vsyncpa [#allocation3 + $0x1], 0  ;;  %s1819_s21 = smov 0   ;;  %s1821_s22 = smov 0  }
   0x2   :  { %s1823_s23 = smov 0   ;;  %s1825_s24 = smov 0  }
   0x3   :  { %s1827_s25 = smov 0   ;;  %s1829_s26 = smov 0  }
   0x4   :  { %s1831_s27 = smov 0   ;;  %s1833_s28 = smov 0  }
   0x5 LB: > { %s1521_s29 = sadd.s32 4294967295, %s1771_s28   ;;  %s1522_s30 = sadd.s32 4294967294, %s1771_s28   ;;  %s1771_s28 = sphi %s1833_s28, %s19_s28   ;;  %s1767_s27 = sphi %s1831_s27, %s2129_s27   ;;  %s1763_s26 = sphi %s1829_s26, %s2128_s26   ;;  %s1759_s25 = sphi %s1827_s25, %s2127_s25   ;;  %s1755_s24 = sphi %s1825_s24, %s2126_s24   ;;  %s1751_s23 = sphi %s1823_s23, %s2125_s23   ;;  %s1747_s22 = sphi %s1821_s22, %s2124_s22   ;;  %s1743_s21 = sphi %s1819_s21, %s2123_s21  }
   0x6   : > { %s28_s7 = sadd.s32 1, %s1763_s26  ;;  %s31_s8 = sadd.s32 1, %s1767_s27 }
   0x7   : > { %p29_p0 = scmp.ge.s32.totalorder %s28_s7, 2  ;;  %p190_p1 = scmp.ne.s32.totalorder %s1751_s23, %s1747_s22 }
   0x8   : > { %p191_p2 = scmp.eq.s32.totalorder %s1521_s29, 3  ;;  %p196_p5 = scmp.ne.s32.totalorder %s1747_s22, %s1743_s21 }
   0x9   : > { %s2131_s7 = smov (%p29_p0, %s28_s7), 0  ;;  %s2133_s8 = smov (!%p29_p0, %s31_s8), %s1767_s27 }
   0xa   : > { %s176_s9 = ssub.s32 %s1763_s26, %s2131_s7  ;;  %p1870_p3 = por %p191_p2, %p190_p1 }
   0xb   : > { %p33_p4 = scmp.ge.s32.totalorder %s2133_s8, 2  ;;  %p197_p6 = scmp.eq.s32.totalorder %s1522_s30, 3 }
   0xc   : > { %p1525_p7 = scmp.ge.s32.totalorder %s1771_s28, 1  ;;  %p252_p9 = scmp.lt.s32.totalorder %s1771_s28, 5 }
   0xd   : > { %s2135_s8 = smov (%p33_p4, %s2133_s8), 0  ;;  %p1879_p8 = por %p197_p6, %p196_p5 }
   0xe   : > { %s175_s12 = ssub.s32 %s1767_s27, %s2135_s8  ;;  %s180_s13 = sadd.s32 1, %s1751_s23 }
   0xf   : > { %s177_s14 = sor.u32 %s176_s9, %s175_s12  ;;  %p253_p10 = pnand %p1525_p7, %p252_p9 }
  0x10   : > { %p178_p11 = scmp.eq.s32.totalorder %s177_s14, 0  ;;  %p295_p12 = scmp.lt.s32.totalorder (!%p253_p10), %s1759_s25, 1 }
  0x11   : > { %256 = sbr.rel (%p253_p10) target bundleno = 614 (0x266), region = 44  ;;  %p297_p13 = scmp.lt.s32.totalorder (!%p253_p10), %s1755_s24, 1 }
  0x12   : > { %s1888_s15 = scalar_select %p178_p11, %s1751_s23, %s180_s13  }
  0x13   : > { %s1774_s13 = smov (!%p253_p10), 127   ;;  %s1777_s30 = smov (!%p253_p10), 95  }
  0x14   : > { %s1778_s9 = smov (!%p253_p10), 94   ;;  %s1779_s14 = smov (!%p253_p10), 64  }
  0x16   : > { %s1893_s16 = scalar_select %p295_p12, %s1759_s25, 1  ;;  %v1773_v0 = vmov 0.0   ;;  %vm341_vm0 = vcmask 1043456   ;;  %v316_v5 = vld [vmem:[%s2116_s2] sm:$0xff]  ;;  %vm334_vm1 = vcmask 31744   ;;  %v1781_v12 = vmov 0  }
  0x17   : > { %s298_s17 = scalar_select %p297_p13, %s1755_s24, 1  ;;  %410 = vmatprep.mubr.f32.mxu0 %v1773_v0  ;;  %497 = vmatprep.mubr.f32.mxu1 %v1773_v0  ;;  %v317_v7 = vld [vmem:[%s2116_s2 + $0x8] sm:$0xf]  ;;  %v1266_v14 = vld [vmem:[%s2118_s4] sm:$0xff]  ;;  %vm331_vm2 = vcmask 1039360   ;;  %v1531_v24 = vld [vmem:[%s2116_s2 + $0x10] sm:$0xff] }
  0x18   : > { %s1594_s18 = smul.u32 6, %s1893_s16  ;;  %1677 = vset.pattern.permute.xlu1 %v1781_v12  ;;  %1676 = vset.pattern.permute.xlu0 %v1781_v12  ;;  %v1267_v15 = vld [vmem:[%s2118_s4 + $0x8] sm:$0xf]  ;;  %vm524_vm3 = vcmask 1031168   ;;  %vm632_vm4 = vcmask 785408   ;;  %v1547_v33 = vld [vmem:[%s2116_s2 + $0x30] sm:$0xff] }
  0x19   : > { %s1593_s19 = smul.u32 3, %s298_s17  ;;  %s1782_s17 = smov 62   ;;  %v1532_v30 = vld [vmem:[%s2116_s2 + $0x18] sm:$0xf]  ;;  %v1541_v35 = vld [vmem:[%s2116_s2 + $0x20] sm:$0xff]  ;;  %vm740_vm5 = vcmask 777216  }
  0x1a   : > { %v1548_v38 = vld [vmem:[%s2116_s2 + $0x38] sm:$0xf]  ;;  %v1542_v41 = vld [vmem:[%s2116_s2 + $0x28] sm:$0xf]  ;;  %vm848_vm6 = vcmask 769024   ;;  %v1553_v45 = vld [vmem:[%s2116_s2 + $0x40] sm:$0xff] }
  0x1b   : > { %s301_s20 = sadd.s32 %s1594_s18, %s1593_s19  ;;  %s1775_s18 = smov 126   ;;  %v1559_v48 = vld [vmem:[%s2116_s2 + $0x50] sm:$0xff]  ;;  %v1554_v50 = vld [vmem:[%s2116_s2 + $0x48] sm:$0xf]  ;;  %vm956_vm7 = vcmask 523264   ;;  %v1565_v56 = vld [vmem:[%s2116_s2 + $0x60] sm:$0xff] }
  0x1c   : > { %s1527_s29 = sshll.u32 %s301_s20, 2  ;;  %v1560_v53 = vld [vmem:[%s2116_s2 + $0x58] sm:$0xf]  ;;  %vm1064_vm8 = vcmask 515072   ;;  %v1566_v60 = vld [vmem:[%s2116_s2 + $0x68] sm:$0xf] }
  0x1d   : > { %s1902_s12 = scalar_lea.vmem %s2114_s0, %s1527_s29  ;;  %s1776_s29 = smov 96   ;;  %v1571_v63 = vld [vmem:[%s2116_s2 + $0x70] sm:$0xff]  ;;  %vm1172_vm9 = vcmask 506880  }
  0x1e   : > { %v318_v1 = vld [vmem:[%s1902_s12 + $0x8] sm:$0xf]  ;;  %v315_v2 = vld [vmem:[%s1902_s12] sm:$0xff] }
  0x1f   : > { %329 = vrot.lane.b32.xlu0 %v318_v1, %s1774_s13  ;;  %325 = vrot.lane.b32.xlu1 %v315_v2, %s1774_s13  ;;  %v517_v3 = vcombine.high %v315_v2, %v315_v2  ;;  %v511_v4 = vld [vmem:[%s1902_s12 + $0x8] sm:$0xf] }
  0x20   : > { %v619_v6 = vld [vmem:[%s1902_s12 + $0x8] sm:$0xf] }
  0x21   : > { %1537 = vmatprep.subr.msk.mxu1 %vm341_vm0, %v517_v3  ;;  %v727_v8 = vld [vmem:[%s1902_s12 + $0x8] sm:$0xf] }
  0x22   : > { %1538 = vmatpush1.msk.msra.mxu1 %vm341_vm0, %v315_v2  ;;  %v835_v9 = vld [vmem:[%s1902_s12 + $0x8] sm:$0xf] }
  0x23   : > { %522 = vrot.lane.b32.xlu0 %v511_v4, %s1775_s18  ;;  %518 = vrot.lane.b32.xlu1 %v315_v2, %s1775_s18  ;;  %v943_v10 = vld [vmem:[%s1902_s12 + $0x8] sm:$0xf]  ;;  %v1572_v4 = vld [vmem:[%s2116_s2 + $0x78] sm:$0xf] }
  0x24   : > { %1539 = vmatmul.mubr.msk.f32.vlgmr.msra.gmra.mxu1 %vm334_vm1, %v316_v5  ;;  %v1051_v11 = vld [vmem:[%s1902_s12 + $0x8] sm:$0xf] }
  0x25   : > { %503 = vmatprep.mubr.f32.mxu1 %v1773_v0  ;;  %v1159_v13 = vld [vmem:[%s1902_s12 + $0x8] sm:$0xf] }
  0x27   : > { %630 = vrot.lane.b32.xlu1 %v619_v6, %s1776_s29  ;;  %327 = vrot.lane.b32.xlu0 %v517_v3, %s1774_s13  ;;  %s1780_s13 = smov 63  }
  0x28   : > { %1540 = vmatmul.mubr.msk.f32.gmra.mxu1 %vm334_vm1, %v317_v7  ;;  %v1577_v7 = vld [vmem:[%s2116_s2 + $0x80] sm:$0xff] }
  0x29   : > { %709 = vmatprep.mubr.f32.mxu1 %v1773_v0 }
  0x2b   : > { %520 = vrot.lane.b32.xlu1 %v517_v3, %s1775_s18  ;;  %628 = vrot.lane.b32.xlu0 %v517_v3, %s1776_s29 }
  0x2f   : > { %736 = vrot.lane.b32.xlu1 %v517_v3, %s1777_s30  ;;  %626 = vrot.lane.b32.xlu0 %v315_v2, %s1776_s29 }
  0x33   : > { %734 = vrot.lane.b32.xlu1 %v315_v2, %s1777_s30  ;;  %738 = vrot.lane.b32.xlu0 %v727_v8, %s1777_s30  ;;  %v1578_v8 = vld [vmem:[%s2116_s2 + $0x88] sm:$0xf] }
  0x37   : > { %846 = vrot.lane.b32.xlu1 %v835_v9, %s1778_s9  ;;  %844 = vrot.lane.b32.xlu0 %v517_v3, %s1778_s9  ;;  %v1286_v9 = vlaneseq }
  0x3b   : > { %952 = vrot.lane.b32.xlu1 %v517_v3, %s1779_s14  ;;  %842 = vrot.lane.b32.xlu0 %v315_v2, %s1778_s9  ;;  %s2029_s9 = sshll.u32 %s1755_s24, 1 }
  0x3c   : > { %p307_p0 = scmp.lt.s32.totalorder %s2029_s9, 3 }
  0x3f   : > { %950 = vrot.lane.b32.xlu1 %v315_v2, %s1779_s14  ;;  %954 = vrot.lane.b32.xlu0 %v943_v10, %s1779_s14  ;;  %s308_s14 = scalar_select %p307_p0, %s2029_s9, 3  ;;  %v2034_v10 = vshrl.u32 %v1286_v9, 7 }
  0x43   : > { %1062 = vrot.lane.b32.xlu1 %v1051_v11, %s1780_s13  ;;  %1060 = vrot.lane.b32.xlu0 %v517_v3, %s1780_s13 }
  0x47   : > { %1168 = vrot.lane.b32.xlu1 %v517_v3, %s1782_s17  ;;  %1058 = vrot.lane.b32.xlu0 %v315_v2, %s1780_s13  ;;  %s1529_s13 = sshll.u32 %s1893_s16, 2 }
  0x4b   : > { %1166 = vrot.lane.b32.xlu1 %v315_v2, %s1782_s17  ;;  %1170 = vrot.lane.b32.xlu0 %v1159_v13, %s1782_s17  ;;  %s310_s17 = sadd.s32 %s1529_s13, %s308_s14  ;;  %v1292_v13 = vsub.s32 1, %v2034_v10  ;;  %s292_s14 = sand.u32 1, %s1747_s22  }
  0x4c   : > { %s1530_s18 = sshll.u32 %s310_s17, 1  ;;  %s1526_s13 = sshll.u32 %s292_s14, 4 }
  0x4d   : > { %s2039_s29 = scalar_lea.vmem %s2115_s1, %s1530_s18  ;;  %s1589_s17 = sshll.u32 %s1759_s25, 2 }
  0x4e   : > { %v1282_v11 = vld [vmem:[%s2039_s29] ss:$2 sm:$0x3]  ;;  %s1417_s18 = sadd.s32 %s1589_s17, %s2029_s9  ;;  %s294_s20 = scalar_lea.vmem [#allocation2], %s1526_s13 }
  0x4f   : > { %1270 = vperm.xlu1 %1677, %v1266_v14   ;;  %1275 = vperm.xlu0 %1676, %v1267_v15   ;;  %v2050_v14 = vrot.slane %v1282_v11, %v1292_v13  ;;  %v1312_v15 = vld [vmem:[%s2119_s5] sm:$0xff]  ;;  %s1590_s19 = sshll.u32 %s1417_s18, 7  ;;  %s1405_s25 = scalar_lea.sflag [#allocation3], %s292_s14 }
  0x50   : > { %s1419_s12 = scalar_lea.hbm %s2120_s6, %s1590_s19  ;;  %s1783_s9 = smov [#allocation2]  }
  0x51   : > { %s1683_s17 = sshll.u32 %s1783_s9, 4  ;;  %s1684_s17 = int_to_ptr.vmem [resolvable:$false] %s1683_s17 }
  0x52   : > { %s1685_s13 = scalar_lea.vmem %s1684_s17, 512 }
  0x53   : > { %1315 = vperm.xlu1 %1677, %v1312_v15  }
  0x91   : > { %v330_v16 = vpop.permute.xlu0 %329  ;;  %v326_v17 = vpop.permute.xlu1 %325 }
  0x95   : > { %v523_v18 = vpop.permute.xlu0 %522  ;;  %v519_v19 = vpop.permute.xlu1 %518 }
  0x99   : > { %v631_v20 = vpop.permute.xlu1 %630  ;;  %v328_v21 = vpop.permute.xlu0 %327 }
  0x9a   : > { %v333_v22 = vsel %vm331_vm2, %v328_v21, %v330_v16  ;;  %v332_v23 = vsel %vm331_vm2, %v326_v17, %v328_v21 }
  0x9b   : > { %1533 = vmatprep.subr.msk.mxu0 %vm341_vm0, %v333_v22 }
  0x9c   : > { %1534 = vmatpush1.msk.msra.mxu0 %vm341_vm0, %v332_v23 }
  0x9d   : > { %v521_v25 = vpop.permute.xlu1 %520  ;;  %1535 = vmatmul.mubr.msk.f32.vlgmr.msra.gmra.mxu0 %vm334_vm1, %v1531_v24  ;;  %v629_v26 = vpop.permute.xlu0 %628 }
  0x9e   : > { %v525_v27 = vsel %vm524_vm3, %v519_v19, %v521_v25  ;;  %v526_v28 = vsel %vm524_vm3, %v521_v25, %v523_v18  ;;  %v634_v29 = vsel %vm632_vm4, %v629_v26, %v631_v20  ;;  %416 = vmatprep.mubr.f32.mxu0 %v1773_v0 }
  0x9f   : > { %1543 = vmatprep.subr.msk.mxu0 %vm341_vm0, %v526_v28  ;;  %1549 = vmatprep.subr.msk.mxu1 %vm341_vm0, %v634_v29 }
  0xa0   : > { %1544 = vmatpush1.msk.msra.mxu0 %vm341_vm0, %v525_v27 }
  0xa1   : > { %v737_v31 = vpop.permute.xlu1 %736  ;;  %1536 = vmatmul.mubr.msk.f32.gmra.mxu0 %vm334_vm1, %v1532_v30  ;;  %v627_v32 = vpop.permute.xlu0 %626 }
  0xa2   : > { %v633_v34 = vsel %vm632_vm4, %v627_v32, %v629_v26  ;;  %601 = vmatprep.mubr.f32.mxu0 %v1773_v0 }
  0xa3   : > { %1550 = vmatpush1.msk.msra.mxu1 %vm341_vm0, %v633_v34 }
  0xa4   : > { %1551 = vmatmul.mubr.msk.f32.vlgmr.msra.gmra.mxu1 %vm334_vm1, %v1547_v33 }
  0xa5   : > { %v735_v36 = vpop.permute.xlu1 %734  ;;  %1545 = vmatmul.mubr.msk.f32.vlgmr.msra.gmra.mxu0 %vm334_vm1, %v1541_v35  ;;  %v739_v37 = vpop.permute.xlu0 %738  ;;  %715 = vmatprep.mubr.f32.mxu1 %v1773_v0 }
  0xa6   : > { %v741_v39 = vsel %vm740_vm5, %v735_v36, %v737_v31  ;;  %v742_v40 = vsel %vm740_vm5, %v737_v31, %v739_v37  ;;  %607 = vmatprep.mubr.f32.mxu0 %v1773_v0 }
  0xa7   : > { %1555 = vmatprep.subr.msk.mxu0 %vm341_vm0, %v742_v40 }
  0xa8   : > { %1556 = vmatpush1.msk.msra.mxu0 %vm341_vm0, %v741_v39  ;;  %1552 = vmatmul.mubr.msk.f32.gmra.mxu1 %vm334_vm1, %v1548_v38 }
  0xa9   : > { %v847_v42 = vpop.permute.xlu1 %846  ;;  %1546 = vmatmul.mubr.msk.f32.gmra.mxu0 %vm334_vm1, %v1542_v41  ;;  %v845_v43 = vpop.permute.xlu0 %844  ;;  %925 = vmatprep.mubr.f32.mxu1 %v1773_v0 }
  0xaa   : > { %v850_v44 = vsel %vm848_vm6, %v845_v43, %v847_v42  ;;  %817 = vmatprep.mubr.f32.mxu0 %v1773_v0 }
  0xab   : > { %1561 = vmatprep.subr.msk.mxu1 %vm341_vm0, %v850_v44 }
  0xad   : > { %v953_v46 = vpop.permute.xlu1 %952  ;;  %1557 = vmatmul.mubr.msk.f32.vlgmr.msra.gmra.mxu0 %vm334_vm1, %v1553_v45  ;;  %v843_v47 = vpop.permute.xlu0 %842 }
  0xae   : > { %v849_v49 = vsel %vm848_vm6, %v843_v47, %v845_v43  ;;  %823 = vmatprep.mubr.f32.mxu0 %v1773_v0 }
  0xaf   : > { %1562 = vmatpush1.msk.msra.mxu1 %vm341_vm0, %v849_v49 }
  0xb0   : > { %1563 = vmatmul.mubr.msk.f32.vlgmr.msra.gmra.mxu1 %vm334_vm1, %v1559_v48 }
  0xb1   : > { %v951_v51 = vpop.permute.xlu1 %950  ;;  %1558 = vmatmul.mubr.msk.f32.gmra.mxu0 %vm334_vm1, %v1554_v50  ;;  %v955_v52 = vpop.permute.xlu0 %954  ;;  %931 = vmatprep.mubr.f32.mxu1 %v1773_v0 }
  0xb2   : > { %v957_v54 = vsel %vm956_vm7, %v951_v51, %v953_v46  ;;  %v958_v55 = vsel %vm956_vm7, %v953_v46, %v955_v52  ;;  %1033 = vmatprep.mubr.f32.mxu0 %v1773_v0 }
  0xb3   : > { %1567 = vmatprep.subr.msk.mxu0 %vm341_vm0, %v958_v55 }
  0xb4   : > { %1564 = vmatmul.mubr.msk.f32.gmra.mxu1 %vm334_vm1, %v1560_v53  ;;  %1568 = vmatpush1.msk.msra.mxu0 %vm341_vm0, %v957_v54 }
  0xb5   : > { %v1063_v57 = vpop.permute.xlu1 %1062  ;;  %1569 = vmatmul.mubr.msk.f32.vlgmr.msra.gmra.mxu0 %vm334_vm1, %v1565_v56  ;;  %v1061_v58 = vpop.permute.xlu0 %1060  ;;  %1141 = vmatprep.mubr.f32.mxu1 %v1773_v0 }
  0xb6   : > { %v1066_v59 = vsel %vm1064_vm8, %v1061_v58, %v1063_v57  ;;  %1039 = vmatprep.mubr.f32.mxu0 %v1773_v0 }
  0xb7   : > { %1573 = vmatprep.subr.msk.mxu1 %vm341_vm0, %v1066_v59 }
  0xb9   : > { %v1169_v61 = vpop.permute.xlu1 %1168  ;;  %1570 = vmatmul.mubr.msk.f32.gmra.mxu0 %vm334_vm1, %v1566_v60  ;;  %v1059_v62 = vpop.permute.xlu0 %1058 }
  0xba   : > { %v1065_v1 = vsel %vm1064_vm8, %v1059_v62, %v1061_v58  ;;  %1249 = vmatprep.mubr.f32.mxu0 %v1773_v0 }
  0xbb   : > { %1574 = vmatpush1.msk.msra.mxu1 %vm341_vm0, %v1065_v1 }
  0xbc   : > { %1575 = vmatmul.mubr.msk.f32.vlgmr.msra.gmra.mxu1 %vm334_vm1, %v1571_v63 }
  0xbd   : > { %v1167_v2 = vpop.permute.xlu1 %1166  ;;  %v1171_v3 = vpop.permute.xlu0 %1170  ;;  %1147 = vmatprep.mubr.f32.mxu1 %v1773_v0 }
  0xbe   : > { %v1173_v5 = vsel %vm1172_vm9, %v1167_v2, %v1169_v61  ;;  %v1174_v6 = vsel %vm1172_vm9, %v1169_v61, %v1171_v3 }
  0xbf   : > { %1579 = vmatprep.subr.msk.mxu0 %vm341_vm0, %v1174_v6 }
  0xc0   : > { %1576 = vmatmul.mubr.msk.f32.gmra.mxu1 %vm334_vm1, %v1572_v4  ;;  %1580 = vmatpush1.msk.msra.mxu0 %vm341_vm0, %v1173_v5 }
  0xc1   : > { %1581 = vmatmul.mubr.msk.f32.vlgmr.msra.gmra.mxu0 %vm334_vm1, %v1577_v7  ;;  %1391 = vmatprep.mubr.f32.mxu1 %v1773_v0 }
  0xc2   : > { %1255 = vmatprep.mubr.f32.mxu0 %v1773_v0  ;;  %v1288_v0 = vsub.s32 0, %v2034_v10 }
  0xc4   : > { %v2045_v12 = vrot.slane %v1282_v11, %v1288_v0 }
  0xc5   : > { %1582 = vmatmul.mubr.msk.f32.gmra.mxu0 %vm334_vm1, %v1578_v8 }
  0xca   : > { %v1271_v8 = vpop.permute.xlu1 %1270 }
  0xce   : > { %v1316_v10 = vpop.permute.xlu1 %1315 }
  0xe4   : > { %v499_v16 = vpop.f32.mrf.mxu1 }
  0xe6   : > { %v501_v17 = vpop.f32.mrf.mxu1 }
  0xe8   : > { %v505_v18 = vpop.f32.mrf.mxu1 }
  0xea   : > { %v507_v21 = vpop.f32.mrf.mxu1 }
 0x15d   : > { %v412_v19 = vpop.f32.mrf.mxu0 }
 0x15e   : > { %v500_v24 = vadd.f32 %v499_v16, %v412_v19 }
 0x15f   : > { %v414_v20 = vpop.f32.mrf.mxu0 }
 0x160   : > { %v502_v27 = vadd.f32 %v501_v17, %v414_v20 }
 0x161   : > { %v418_v22 = vpop.f32.mrf.mxu0 }
 0x162   : > { %v506_v48 = vadd.f32 %v505_v18, %v418_v22 }
 0x163   : > { %v420_v23 = vpop.f32.mrf.mxu0 }
 0x164   : > { %v711_v25 = vpop.f32.mrf.mxu1  ;;  %v508_v50 = vadd.f32 %v507_v21, %v420_v23 }
 0x165   : > { %v603_v26 = vpop.f32.mrf.mxu0 }
 0x166   : > { %v614_v28 = vadd.f32 %v603_v26, %v500_v24  ;;  %v713_v29 = vpop.f32.mrf.mxu1 }
 0x167   : > { %v605_v30 = vpop.f32.mrf.mxu0 }
 0x168   : > { %v615_v31 = vadd.f32 %v605_v30, %v502_v27  ;;  %v722_v32 = vadd.f32 %v711_v25, %v614_v28  ;;  %v717_v33 = vpop.f32.mrf.mxu1  ;;  %v1583_v27 = vld [vmem:[%s2039_s29 + $0x1] ss:$2 sm:$0x3]  ;;  %v1276_v28 = vpop.permute.xlu0 %1275  ;;  %s1421_s29 = sshll.u32 %s294_s20, 4  ;;  %s1422_s29 = int_to_ptr.vmem [resolvable:$true] %s1421_s29 }
 0x169   : > { %v609_v34 = vpop.f32.mrf.mxu0  ;;  %s1679_s30 = scalar_lea.vmem %s1422_s29, 256  ;;  %p1686_p5 = scmp.lt.s32.totalorder %s1422_s29, %s1684_s17 }
 0x16a   : > { %v723_v35 = vadd.f32 %v713_v29, %v615_v31  ;;  %v719_v37 = vpop.f32.mrf.mxu1  ;;  %v616_v51 = vadd.f32 %v609_v34, %v506_v48  ;;  %p1680_p1 = scmp.ne.s32.totalorder %s1422_s29, %s1679_s30  ;;  %p1687_p6 = scmp.lt.s32.totalorder %s1685_s13, %s1679_s30 }
 0x16b   : > { %v611_v36 = vpop.f32.mrf.mxu0 }
 0x16c   : > { %v617_v55 = vadd.f32 %v611_v36, %v508_v50  ;;  %v724_v57 = vadd.f32 %v717_v33, %v616_v51  ;;  %v1302_v33 = vrot.slane %v1583_v27, %v1288_v0  ;;  %p1681_p2 = pnand %p1680_p1, %p1870_p3  ;;  %p1688_p7 = por %p1687_p6, %p1686_p5 }
 0x16d   : > { %v819_v38 = vpop.f32.mrf.mxu0 }
 0x16e   : > { %v830_v39 = vadd.f32 %v819_v38, %v722_v32  ;;  %v725_v60 = vadd.f32 %v719_v37, %v617_v55  ;;  %v1306_v32 = vrot.slane %v1583_v27, %v1292_v13  ;;  %v1311_v37 = vld [vmem:[%s2117_s3] sm:$0xff]  ;;  %p1682_p4 = pneg %p1681_p2 }
 0x16f   : > { %v821_v40 = vpop.f32.mrf.mxu0 }
 0x170   : > { %v831_v41 = vadd.f32 %v821_v40, %v723_v35  ;;  %v927_v42 = vpop.f32.mrf.mxu1  ;;  %p1689_p9 = pnand %p1688_p7, %p1682_p4 }
 0x171   : > { %v938_v43 = vadd.f32 %v927_v42, %v830_v39  ;;  %v825_v44 = vpop.f32.mrf.mxu0 }
 0x172   : > { %v929_v45 = vpop.f32.mrf.mxu1  ;;  %v832_v61 = vadd.f32 %v825_v44, %v724_v57 }
 0x173   : > { %v939_v46 = vadd.f32 %v929_v45, %v831_v41  ;;  %v827_v47 = vpop.f32.mrf.mxu0 }
 0x174   : > { %v933_v52 = vpop.f32.mrf.mxu1  ;;  %v833_v1 = vadd.f32 %v827_v47, %v725_v60 }
 0x175   : > { %v1035_v49 = vpop.f32.mrf.mxu0  ;;  %v940_v5 = vadd.f32 %v933_v52, %v832_v61 }
 0x176   : > { %v1046_v53 = vadd.f32 %v1035_v49, %v938_v43  ;;  %v935_v58 = vpop.f32.mrf.mxu1 }
 0x177   : > { %v1037_v54 = vpop.f32.mrf.mxu0  ;;  %v941_v9 = vadd.f32 %v935_v58, %v833_v1 }
 0x178   : > { %v1047_v56 = vadd.f32 %v1037_v54, %v939_v46 }
 0x179   : > { %v1041_v59 = vpop.f32.mrf.mxu0 }
 0x17a   : > { %v1048_v11 = vadd.f32 %v1041_v59, %v940_v5 }
 0x17b   : > { %v1043_v3 = vpop.f32.mrf.mxu0 }
 0x17c   : > { %v1143_v62 = vpop.f32.mrf.mxu1  ;;  %v1049_v18 = vadd.f32 %v1043_v3, %v941_v9 }
 0x17d   : > { %v1154_v63 = vadd.f32 %v1143_v62, %v1046_v53 }
 0x17e   : > { %v1145_v2 = vpop.f32.mrf.mxu1 }
 0x17f   : > { %v1155_v4 = vadd.f32 %v1145_v2, %v1047_v56 }
 0x180   : > { %v1149_v6 = vpop.f32.mrf.mxu1 }
 0x181   : > { %v1251_v7 = vpop.f32.mrf.mxu0  ;;  %v1156_v19 = vadd.f32 %v1149_v6, %v1048_v11 }
 0x182   : > { %v1262_v15 = vadd.f32 %v1251_v7, %v1154_v63  ;;  %v1151_v16 = vpop.f32.mrf.mxu1 }
 0x183   : > { %v1253_v17 = vpop.f32.mrf.mxu0  ;;  %v1157_v23 = vadd.f32 %v1151_v16, %v1049_v18 }
 0x184   : > { %v1278_v20 = vadd.f32 %v1271_v8, %v1262_v15  ;;  %v1263_v21 = vadd.f32 %v1253_v17, %v1155_v4 }
 0x185   : > { %v1257_v22 = vpop.f32.mrf.mxu0 }
 0x186   : > { %v1296_v24 = vmul.f32 %v2045_v12, %v1278_v20  ;;  %v1279_v25 = vadd.f32 %v1271_v8, %v1263_v21  ;;  %v1264_v26 = vadd.f32 %v1257_v22, %v1156_v19 }
 0x187   : > { %v1259_v29 = vpop.f32.mrf.mxu0 }
 0x188   : > { %v1297_v30 = vmul.f32 %v2050_v14, %v1279_v25  ;;  %v1265_v31 = vadd.f32 %v1259_v29, %v1157_v23  ;;  %v1280_v34 = vadd.f32 %v1276_v28, %v1264_v26 }
 0x18a   : > { %v1281_v35 = vadd.f32 %v1276_v28, %v1265_v31  ;;  %v1309_v36 = vmul.f32 %v1302_v33, %v1280_v34 }
 0x18c   : > { %v1310_v12 = vmul.f32 %v1306_v32, %v1281_v35 }
 0x18e   : > { %1584 = vmatprep.subr.msk.mxu1 %vm341_vm0, %v1310_v12 }
 0x18f   : > { %1585 = vmatpush1.msk.msra.mxu1 %vm341_vm0, %v1309_v36 }
 0x190   : > { %1586 = vmatmul.mubr.msk.f32.vlgmr.msra.gmra.mxu1 %vm334_vm1, %v1311_v37 }
 0x250   : > { %v1393_v13 = vpop.f32.mrf.mxu1 }
 0x251   : > { %v1394_v0 = vadd.f32 %v1393_v13, %v1316_v10 }
 0x252   : > { %v1395_v14 = vpop.f32.mrf.mxu1 }
 0x253   : > { %v1398_v38 = vmul.f32 %v1394_v0, %v1302_v33  ;;  %v1396_v39 = vadd.f32 %v1395_v14, %v1316_v10 }
 0x255   : > { %v1400_v40 = vadd.f32 %v1398_v38, %v1296_v24  ;;  %v1399_v41 = vmul.f32 %v1396_v39, %v1306_v32 }
 0x257   : > { %v1401_v42 = vadd.f32 %v1399_v41, %v1297_v30  ;;  %1402 = vst [vmem:[%s294_s20] sm:$0xff] %v1400_v40 }
 0x259   : > { %1403 = vst [vmem:[%s294_s20 + $0x8] sm:$0xff] %v1401_v42 }
 0x25a   : > { %1692 = shalt.err (!%p1689_p9)
}
 0x25b   : > { %s1693_s18 = scalar_lea.hbm %s1419_s12, 256  ;;  %s1697_s20 = scalar_lea.hbm %s2120_s6, 1024 }
 0x25c   : > { %p1694_p10 = scmp.ne.s32.totalorder %s1419_s12, %s1693_s18  ;;  %p1698_p13 = scmp.lt.s32.totalorder %s1419_s12, %s2120_s6 }
 0x25d   : > { %p1699_p0 = scmp.lt.s32.totalorder %s1697_s20, %s1693_s18 }
 0x25e   : > { %p1695_p11 = pnand %p1694_p10, %p1870_p3 }
 0x25f   : > { %p1700_p1 = por %p1699_p0, %p1698_p13 }
 0x260   : > { %p1696_p12 = pneg %p1695_p11 }
 0x262   : > { %p1701_p2 = pnand %p1700_p1, %p1696_p12 }
 0x264   : > { %1704 = shalt.err (!%p1701_p2)
}
 0x265   : > { %1595 = dma.vmem_to_hbm [thread:$0]  (%p1870_p3), %s1422_s29, 256, %s1419_s12, %s1405_s25  }
 0x266 PF: > { %p1601_p4 = scmp.ge.s32.totalorder %s1771_s28, 2  ;;  %s1433_s30 = sand.u32 1, %s1743_s21  }
 0x267   : > { %s1434_s9 = scalar_lea.sflag [#allocation3], %s1433_s30 }
 0x268   : > { %p1598_p5 = pnand %p1601_p4, %p1879_p8 }
 0x26a   : > { %p1599_p6 = pneg %p1598_p5 }
 0x26c   : > { %1738 = dma.done.wait (%p1599_p6), %s1434_s9, 256  }
 0x26d   : > { %1740 = vsyncadd (%p1599_p6), %s1434_s9, 4294967040  ;;  %s19_s28 = sadd.s32 1, %s1771_s28   ;;  %s2123_s21 = smov %s1747_s22 }
 0x26e   : > { %p16_p7 = scmp.ge.s32.totalorder %s19_s28, 6   ;;  %s2124_s22 = smov %s1751_s23 }
 0x26f   : > { %s2125_s23 = smov %s1888_s15  ;;  %s2126_s24 = smov %s1763_s26 }
 0x270   : > { %s2127_s25 = smov %s1767_s27  ;;  %s2128_s26 = smov %s2131_s7 }
 0x271   : > { %s2129_s27 = smov %s2135_s8  ;;  %18 = sbr.rel (!%p16_p7) target bundleno = 5 (0x5), region = 91 }
 0x276   :  { %1439 = vsyncpa [#allocation3], 1 }
 0x277   :  { %1441 = vsyncpa [#allocation3 + $0x1], 1 }

</bundles_post_ra>
